<compile_context>
chip_gen: v5e
topology: v5e:2x2
jax: 0.10.0
libtpu: 0.0.40
codegen_flags: <defaults>
</compile_context>

<pallas_src>
import math

import jax
import jax.numpy as jnp
from jax.experimental import pallas as pl
from jax.experimental.pallas import tpu as pltpu


def _ffn_kernel(x_ref, w1t_ref, b1_ref, w2t_ref, b2_ref, out_ref, acc_ref):
    # block shapes:
    #   x_ref   : (block_m, d_model)  f32
    #   w1t_ref : (d_model, tile_h)   bf16   (pre-transposed, pre-cast)
    #   b1_ref  : (1, tile_h)         f32
    #   w2t_ref : (tile_h, d_model)   bf16   (pre-transposed, pre-cast)
    #   b2_ref  : (1, d_model)        f32
    #   out_ref : (block_m, d_model)  f32
    #   acc_ref : (block_m, d_model)  f32 scratch accumulator (resident over k)
    k = pl.program_id(1)

    @pl.when(k == 0)
    def _():
        acc_ref[...] = jnp.zeros_like(acc_ref)

    # linear1 for this hidden tile: bf16 MXU inputs, f32 accumulation.
    x = x_ref[...].astype(jnp.bfloat16)
    h = jnp.dot(x, w1t_ref[...], preferred_element_type=jnp.float32)
    # bias add + ReLU in f32 on the VPU.
    h = jnp.maximum(h + b1_ref[...], 0.0)

    # dropout(p=0.0, eval) -> identity

    # linear2 partial product for this hidden tile (exact: ReLU/bias are
    # elementwise over hidden, so hidden tiles sum independently).
    acc_ref[...] += jnp.dot(h.astype(jnp.bfloat16), w2t_ref[...],
                            preferred_element_type=jnp.float32)

    @pl.when(k == pl.num_programs(1) - 1)
    def _():
        out_ref[...] = acc_ref[...] + b2_ref[...]


def prepare_ffn_params(w1, b1, w2, b2):
    """One-time parameter prep (call OUTSIDE the per-step forward):
    nn.Linear stores W as (out, in); the kernel consumes (in, out) bf16."""
    w1t = jnp.asarray(w1).T.astype(jnp.bfloat16)        # (d_model, hidden)
    w2t = jnp.asarray(w2).T.astype(jnp.bfloat16)        # (hidden, d_model)
    b1r = jnp.asarray(b1, jnp.float32).reshape(1, -1)   # (1, hidden)
    b2r = jnp.asarray(b2, jnp.float32).reshape(1, -1)   # (1, d_model)
    return w1t, b1r, w2t, b2r


def _round_down_to(v, m):
    return max(m, (v // m) * m)


def _pick_tiles(n_rows, d_model, hidden):
    # Row tile: multiple of 8 (f32 sublane), 256-512 preferred at large N,
    # >=2 grid steps when possible so v7x's two TensorCores both get work.
    if n_rows <= 8:
        block_m = n_rows
    else:
        block_m = min(512, _round_down_to(n_rows, 8))
        if block_m >= n_rows and n_rows >= 16:
            block_m = _round_down_to(n_rows // 2, 8)
    # Hidden tile: full hidden when the bf16 weight pair is small enough to be
    # VMEM-resident, else a multiple-of-128 divisor of hidden.
    if hidden % 128 != 0 or 2 * d_model * hidden * 2 <= 16 * 1024 * 1024:
        tile_h = hidden
    else:
        tile_h = max(128, _round_down_to((4 * 1024 * 1024) // max(d_model, 1), 128))
        tile_h = min(tile_h, hidden)
        while hidden % tile_h != 0:
            tile_h -= 128
    return block_m, tile_h


def positionwise_ffn(x, w1t, b1r, w2t, b2r, *, block_m=None, tile_h=None):
    """x: (B, S, d_model) f32.  (w1t, b1r, w2t, b2r) from prepare_ffn_params:
    w1t (d_model, hidden) bf16, b1r (1, hidden) f32, w2t (hidden, d_model) bf16,
    b2r (1, d_model) f32.  Returns (B, S, d_model) f32."""
    B, S, d_model = x.shape
    hidden = w1t.shape[1]
    N = B * S

    auto_m, auto_h = _pick_tiles(N, d_model, hidden)
    block_m = auto_m if block_m is None else block_m
    tile_h = auto_h if tile_h is None else tile_h
    n_i = pl.cdiv(N, block_m)
    n_k = pl.cdiv(hidden, tile_h)

    # Flatten batch*seq into one lane-dense row-major slab -> one big matmul pair.
    x2 = x.reshape(N, d_model)

    # Resident (constant-index) operands are single-buffered; streaming ones
    # keep default-depth double-buffering.
    w_mode = pl.Buffered(1) if n_k == 1 else pl.Buffered(2)
    row_map = lambda i, k: (i, 0)

    grid_spec = pltpu.PrefetchScalarGridSpec(
        num_scalar_prefetch=0,
        grid=(n_i, n_k),
        in_specs=[
            pl.BlockSpec((block_m, d_model), row_map),
            pl.BlockSpec((d_model, tile_h), lambda i, k: (0, k), pipeline_mode=w_mode),
            pl.BlockSpec((1, tile_h), lambda i, k: (0, k), pipeline_mode=w_mode),
            pl.BlockSpec((tile_h, d_model), lambda i, k: (k, 0), pipeline_mode=w_mode),
            pl.BlockSpec((1, d_model), lambda i, k: (0, 0), pipeline_mode=pl.Buffered(1)),
        ],
        out_specs=pl.BlockSpec((block_m, d_model), row_map),
        scratch_shapes=[pltpu.VMEM((block_m, d_model), jnp.float32)],
    )

    # Explicit VMEM budget (bytes): pipelined tiles + accumulator + live h tile.
    wb = 1 if n_k == 1 else 2
    vmem_est = (
        2 * block_m * d_model * 4          # x tile (f32, double-buffered)
        + wb * d_model * tile_h * 2        # w1t tile (bf16)
        + wb * tile_h * 4                  # b1 tile (f32)
        + wb * tile_h * d_model * 2        # w2t tile (bf16)
        + d_model * 4                      # b2 (f32)
        + 2 * block_m * d_model * 4        # out tile (f32, double-buffered)
        + block_m * d_model * 4            # f32 accumulator scratch
        + block_m * tile_h * 4             # live h intermediate
    )
    vmem_limit = int(min(64 * 1024 * 1024, max(32 * 1024 * 1024, 2 * vmem_est)))

    cost = pl.CostEstimate(
        flops=4 * N * d_model * hidden,
        transcendentals=0,
        bytes_accessed=(2 * N * d_model * 4            # x in + y out (f32)
                        + 2 * d_model * hidden * 2     # both weights (bf16)
                        + hidden * 4 + d_model * 4),   # biases (f32)
    )

    out2 = pl.pallas_call(
        _ffn_kernel,
        grid_spec=grid_spec,
        out_shape=jax.ShapeDtypeStruct((N, d_model), jnp.float32),
        compiler_params=pltpu.CompilerParams(
            dimension_semantics=("parallel", "arbitrary"),
            vmem_limit_bytes=vmem_limit,
        ),
        cost_estimate=cost,
    )(x2, w1t, b1r, w2t, b2r)

    return out2.reshape(B, S, d_model)


def _reference(x, w1, b1, w2, b2):
    """Pure-JAX f32 replica of the PyTorch module (eval / p=0.0 dropout)."""
    h = jnp.maximum(x @ w1.T + b1, 0.0)
    return h @ w2.T + b2


def _init_linear(key, d_in, d_out):
    """nn.Linear-style init: W ~ U(-1/sqrt(fan_in), 1/sqrt(fan_in)), shape (d_out, d_in)."""
    kw, kb = jax.random.split(key)
    bound = 1.0 / math.sqrt(d_in)
    w = jax.random.uniform(kw, (d_out, d_in), jnp.float32, -bound, bound)
    b = jax.random.uniform(kb, (d_out,), jnp.float32, -bound, bound)
    return w, b


if __name__ == "__main__":
    B, S, d_model, hidden_dim = 2, 8, 32, 64

    root = jax.random.PRNGKey(0)
    k_x, k_l1, k_l2 = jax.random.split(root, 3)

    x = jax.random.normal(k_x, (B, S, d_model), jnp.float32)
    w1, b1 = _init_linear(k_l1, d_model, hidden_dim)   # linear1: d_model -> hidden
    w2, b2 = _init_linear(k_l2, hidden_dim, d_model)   # linear2: hidden -> d_model

    # One-time weight layout/dtype prep (kept out of the per-call forward).
    params = prepare_ffn_params(w1, b1, w2, b2)

    out = positionwise_ffn(x, *params)
    out = jax.block_until_ready(out)

    ref = _reference(x, w1, b1, w2, b2)
    assert out.shape == (B, S, d_model)
    # bf16 MXU inputs with f32 accumulation => tolerance looser than pure f32.
    assert jnp.allclose(out, ref, atol=2e-2, rtol=2e-2), float(jnp.max(jnp.abs(out - ref)))

    print("KERNEL_OK")
</pallas_src>

<mosaic_0001>
module attributes {stable_mosaic.version = 11 : i64} {
  func.func @_ffn_kernel(%arg0: i32, %arg1: i32, %arg2: memref<8x32xf32, #tpu.memory_space<vmem>>, %arg3: memref<32x64xbf16, #tpu.memory_space<vmem>>, %arg4: memref<1x64xf32, #tpu.memory_space<vmem>>, %arg5: memref<64x32xbf16, #tpu.memory_space<vmem>>, %arg6: memref<1x32xf32, #tpu.memory_space<vmem>>, %arg7: memref<8x32xf32, #tpu.memory_space<vmem>>, %arg8: memref<8x32xf32, #tpu.memory_space<vmem>>) attributes {dimension_semantics = [#tpu.dimension_semantics<parallel>, #tpu.dimension_semantics<arbitrary>], iteration_bounds = array<i64: 2, 1>, scalar_prefetch = 0 : i64, scratch_operands = 1 : i64, tpu.core_type = #tpu.core_type<tc>, window_params = [{transform_indices = @transform_0, window_bounds = array<i64: 8, 32>}, {pipeline_mode = #tpu.pipeline_mode<synchronous>, transform_indices = @transform_1, window_bounds = array<i64: 32, 64>}, {pipeline_mode = #tpu.pipeline_mode<synchronous>, transform_indices = @transform_2, window_bounds = array<i64: 1, 64>}, {pipeline_mode = #tpu.pipeline_mode<synchronous>, transform_indices = @transform_3, window_bounds = array<i64: 64, 32>}, {pipeline_mode = #tpu.pipeline_mode<synchronous>, transform_indices = @transform_4, window_bounds = array<i64: 1, 32>}, {transform_indices = @transform_5, window_bounds = array<i64: 8, 32>}]} {
    %c0_i32 = arith.constant 0 : i32
    %0 = arith.cmpi eq, %arg1, %c0_i32 : i32
    %1 = arith.extui %0 : i1 to i32
    %c0_i32_0 = arith.constant 0 : i32
    %2 = arith.cmpi ne, %1, %c0_i32_0 : i32
    scf.if %2 {
      %cst_16 = arith.constant 0.000000e+00 : f32
      %21 = vector.broadcast %cst_16 : f32 to vector<8x32xf32>
      %c0_17 = arith.constant 0 : index
      %c0_18 = arith.constant 0 : index
      %22 = vector.load %arg8[%c0_17, %c0_18] : memref<8x32xf32, #tpu.memory_space<vmem>>, vector<8x32xf32>
      tpu.vector_store %arg8[%c0_17, %c0_18], %21 {strides = array<i32>} : memref<8x32xf32, #tpu.memory_space<vmem>>, vector<8x32xf32>,
    } else {
    }
    %c0 = arith.constant 0 : index
    %c0_1 = arith.constant 0 : index
    %3 = vector.load %arg2[%c0, %c0_1] : memref<8x32xf32, #tpu.memory_space<vmem>>, vector<8x32xf32>
    %4 = arith.truncf %3 : vector<8x32xf32> to vector<8x32xbf16>
    %c0_2 = arith.constant 0 : index
    %c0_3 = arith.constant 0 : index
    %5 = vector.load %arg3[%c0_2, %c0_3] : memref<32x64xbf16, #tpu.memory_space<vmem>>, vector<32x64xbf16>
    %cst = arith.constant dense<0.000000e+00> : vector<8x64xf32>
    %6 = tpu.matmul %4, %5, %cst {dimension_numbers = #tpu.dot_dimension_numbers<[1], [0], [0], [1], [0, 0, 1, 1], [], []>} : vector<8x32xbf16>, vector<32x64xbf16>, vector<8x64xf32> -> vector<8x64xf32>
    %c0_4 = arith.constant 0 : index
    %c0_5 = arith.constant 0 : index
    %7 = vector.load %arg4[%c0_4, %c0_5] : memref<1x64xf32, #tpu.memory_space<vmem>>, vector<1x64xf32>
    %8 = vector.broadcast %7 : vector<1x64xf32> to vector<8x64xf32>
    %9 = arith.addf %6, %8 : vector<8x64xf32>
    %cst_6 = arith.constant 0.000000e+00 : f32
    %10 = vector.broadcast %cst_6 : f32 to vector<8x64xf32>
    %11 = arith.maximumf %9, %10 : vector<8x64xf32>
    %c0_7 = arith.constant 0 : index
    %c0_8 = arith.constant 0 : index
    %12 = vector.load %arg8[%c0_7, %c0_8] : memref<8x32xf32, #tpu.memory_space<vmem>>, vector<8x32xf32>
    %13 = arith.truncf %11 : vector<8x64xf32> to vector<8x64xbf16>
    %c0_9 = arith.constant 0 : index
    %c0_10 = arith.constant 0 : index
    %14 = vector.load %arg5[%c0_9, %c0_10] : memref<64x32xbf16, #tpu.memory_space<vmem>>, vector<64x32xbf16>
    %cst_11 = arith.constant dense<0.000000e+00> : vector<8x32xf32>
    %15 = tpu.matmul %13, %14, %cst_11 {dimension_numbers = #tpu.dot_dimension_numbers<[1], [0], [0], [1], [0, 0, 1, 1], [], []>} : vector<8x64xbf16>, vector<64x32xbf16>, vector<8x32xf32> -> vector<8x32xf32>
    %16 = arith.addf %12, %15 : vector<8x32xf32>
    %c0_12 = arith.constant 0 : index
    %c0_13 = arith.constant 0 : index
    %17 = vector.load %arg8[%c0_12, %c0_13] : memref<8x32xf32, #tpu.memory_space<vmem>>, vector<8x32xf32>
    tpu.vector_store %arg8[%c0_12, %c0_13], %16 {strides = array<i32>} : memref<8x32xf32, #tpu.memory_space<vmem>>, vector<8x32xf32>,
    %c0_i32_14 = arith.constant 0 : i32
    %18 = arith.cmpi eq, %arg1, %c0_i32_14 : i32
    %19 = arith.extui %18 : i1 to i32
    %c0_i32_15 = arith.constant 0 : i32
    %20 = arith.cmpi ne, %19, %c0_i32_15 : i32
    scf.if %20 {
      %c0_16 = arith.constant 0 : index
      %c0_17 = arith.constant 0 : index
      %21 = vector.load %arg8[%c0_16, %c0_17] : memref<8x32xf32, #tpu.memory_space<vmem>>, vector<8x32xf32>
      %c0_18 = arith.constant 0 : index
      %c0_19 = arith.constant 0 : index
      %22 = vector.load %arg6[%c0_18, %c0_19] : memref<1x32xf32, #tpu.memory_space<vmem>>, vector<1x32xf32>
      %23 = vector.broadcast %22 : vector<1x32xf32> to vector<8x32xf32>
      %24 = arith.addf %21, %23 : vector<8x32xf32>
      %c0_20 = arith.constant 0 : index
      %c0_21 = arith.constant 0 : index
      %25 = vector.load %arg7[%c0_20, %c0_21] : memref<8x32xf32, #tpu.memory_space<vmem>>, vector<8x32xf32>
      tpu.vector_store %arg7[%c0_20, %c0_21], %24 {strides = array<i32>} : memref<8x32xf32, #tpu.memory_space<vmem>>, vector<8x32xf32>,
    } else {
    }
    return
  }
  func.func @transform_0(%arg0: i32, %arg1: i32) -> (i32, i32) {
    %c0_i32 = arith.constant 0 : i32
    %c0_i32_0 = arith.constant 0 : i32
    return %arg0, %c0_i32 : i32, i32
  }
  func.func @transform_1(%arg0: i32, %arg1: i32) -> (i32, i32) {
    %c0_i32 = arith.constant 0 : i32
    %c0_i32_0 = arith.constant 0 : i32
    return %c0_i32, %arg1 : i32, i32
  }
  func.func @transform_2(%arg0: i32, %arg1: i32) -> (i32, i32) {
    %c0_i32 = arith.constant 0 : i32
    %c0_i32_0 = arith.constant 0 : i32
    return %c0_i32, %arg1 : i32, i32
  }
  func.func @transform_3(%arg0: i32, %arg1: i32) -> (i32, i32) {
    %c0_i32 = arith.constant 0 : i32
    %c0_i32_0 = arith.constant 0 : i32
    return %arg1, %c0_i32 : i32, i32
  }
  func.func @transform_4(%arg0: i32, %arg1: i32) -> (i32, i32) {
    %c0_i32 = arith.constant 0 : i32
    %c0_i32_0 = arith.constant 0 : i32
    %c0_i32_1 = arith.constant 0 : i32
    return %c0_i32, %c0_i32_0 : i32, i32
  }
  func.func @transform_5(%arg0: i32, %arg1: i32) -> (i32, i32) {
    %c0_i32 = arith.constant 0 : i32
    %c0_i32_0 = arith.constant 0 : i32
    return %arg0, %c0_i32 : i32, i32
  }
}

</mosaic_0001>

<bundles_post_ra>
// kernel: tpu_custom_call.1
= control target key start
LH: loop header
LB: loop body
LE: loop exit
PB: predicated region body
PF: predicated region fallthrough
CT: control target
= control target key end

     0   :  { %10 = vsyncpa [#allocation4], 0  ;;  %s860_s0 = inlined_call_operand.vmem [shape: f32[16,32], index: 0, kind: input, shape index: {}]   ;;  %s861_s1 = inlined_call_operand.vmem [shape: bf16[32,64], index: 1, kind: input, shape index: {}]   ;;  %s862_s2 = inlined_call_operand.vmem [shape: f32[1,64], index: 2, kind: input, shape index: {}]   ;;  %s863_s3 = inlined_call_operand.vmem [shape: bf16[64,32], index: 3, kind: input, shape index: {}]   ;;  %s864_s4 = inlined_call_operand.vmem [shape: f32[1,32], index: 4, kind: input, shape index: {}]   ;;  %s865_s5 = inlined_call_operand.hbm [shape: f32[16,32], index: 5, kind: output, shape index: {}]  }
   0x1   :  { %12 = vsyncpa [#allocation4 + $0x1], 0  ;;  %s735_s18 = smov 0   ;;  %s737_s19 = smov 0  }
   0x2   :  { %s739_s20 = smov 0   ;;  %s741_s21 = smov 0  }
   0x3   :  { %s743_s22 = smov 0   ;;  %s745_s23 = smov 0  }
   0x4 LB: > { %s520_s24 = sadd.s32 4294967295, %s702_s23   ;;  %s521_s25 = sadd.s32 4294967294, %s702_s23   ;;  %s702_s23 = sphi %s745_s23, %s18_s23   ;;  %s698_s22 = sphi %s743_s22, %s872_s22   ;;  %s694_s21 = sphi %s741_s21, %s871_s21   ;;  %s690_s20 = sphi %s739_s20, %s870_s20   ;;  %s686_s19 = sphi %s737_s19, %s869_s19   ;;  %s682_s18 = sphi %s735_s18, %s868_s18  }
   0x5   : > { %s30_s26 = sadd.s32 1, %s698_s22  ;;  %s162_s27 = sadd.s32 1, %s690_s20 }
   0x6   : > { %p32_p0 = scmp.ge.s32.totalorder %s30_s26, 2  ;;  %p172_p1 = scmp.ne.s32.totalorder %s690_s20, %s686_s19 }
   0x7   : > { %p173_p2 = scmp.eq.s32.totalorder %s520_s24, 1  ;;  %p178_p3 = scmp.ne.s32.totalorder %s686_s19, %s682_s18 }
   0x8   : > { %s874_s26 = smov (%p32_p0, %s30_s26), 0  ;;  %p179_p5 = scmp.eq.s32.totalorder %s521_s25, 1 }
   0x9   : > { %p775_p4 = por %p173_p2, %p172_p1  ;;  %s159_s29 = ssub.s32 %s698_s22, %s874_s26 }
   0xa   : > { %p527_p6 = scmp.ge.s32.totalorder %s702_s23, 1  ;;  %p160_p7 = scmp.eq.s32.totalorder %s159_s29, 0 }
   0xb   : > { %p782_p8 = por %p179_p5, %p178_p3  ;;  %p229_p9 = scmp.lt.s32.totalorder %s702_s23, 3 }
   0xc   : > { %s788_s6 = scalar_select %p160_p7, %s690_s20, %s162_s27  }
   0xd   : > { %p230_p10 = pnand %p527_p6, %p229_p9 }
   0xe   : > { %p268_p11 = scmp.lt.s32.totalorder (!%p230_p10), %s694_s21, 1  ;;  %s265_s11 = sand.u32 (!%p230_p10), 1, %s686_s19  }
   0xf   : > { %233 = sbr.rel (%p230_p10) target bundleno = 301 (0x12d), region = 40  ;;  %s528_s12 = sshll.u32 (!%p230_p10), %s265_s11, 3 }
  0x14   : > { %v561_v0 = vld [vmem:[%s861_s1 + $0x8] sm:$0xff]  ;;  %vm290_vm0 = vcmask 261120   ;;  %v565_v1 = vld [vmem:[%s863_s3 + $0x18] sm:$0xff]  ;;  %v704_v2 = vmov 0.0   ;;  %v560_v3 = vld [vmem:[%s861_s1] sm:$0xff]  ;;  %s269_s13 = scalar_select %p268_p11, %s694_s21, 1 }
  0x15   : > { %291 = vst.msk [vmem:[#allocation2] sm:$0xff] %vm290_vm0, %v704_v2  ;;  %324 = vmatpush.bf16.msra.mxu0 %v561_v0  ;;  %374 = vmatpush.bf16.msra.mxu1 %v565_v1  ;;  %v564_v4 = vld [vmem:[%s863_s3 + $0x10] sm:$0xff]  ;;  %v563_v7 = vld [vmem:[%s863_s3 + $0x8] sm:$0xff]  ;;  %v562_v8 = vld [vmem:[%s863_s3] sm:$0xff]  ;;  %vm366_vm1 = vcmask 523264  }
  0x16   : > { %s529_s16 = sshll.u32 %s269_s13, 3  ;;  %v622_v9 = vld [vmem:[%s862_s2] ss:$0 sm:$0xff]  ;;  %s557_s13 = sshll.u32 %s694_s21, 3 }
  0x17   : > { %s271_s25 = scalar_lea.vmem %s860_s0, %s529_s16  ;;  %s406_s16 = scalar_lea.hbm %s865_s5, %s557_s13  ;;  %v623_v18 = vld [vmem:[%s864_s4] ss:$0 sm:$0xff] }
  0x18   : > { %v292_v5 = vld [vmem:[%s271_s25] sm:$0xff]  ;;  %s267_s25 = scalar_lea.vmem [#allocation3], %s528_s12  ;;  %s410_s29 = sshll.u32 %s406_s16, 4  ;;  %s411_s29 = int_to_ptr.hbm [resolvable:$true] %s410_s29 }
  0x19   : > { %325 = vmatpush.bf16.msra.mxu0 %v560_v3  ;;  %375 = vmatpush.bf16.msra.mxu1 %v564_v4  ;;  %v293_v6 = vpack.c.bf16 %v292_v5, %v292_v5  ;;  %s408_s27 = sshll.u32 %s267_s25, 4  ;;  %s396_s21 = scalar_lea.sflag [#allocation4], %s265_s11  ;;  %s409_s27 = int_to_ptr.vmem [resolvable:$true] %s408_s27 }
  0x1a   : > { %s638_s7 = sshra.s32 %s411_s29, 4  ;;  %s644_s12 = scalar_lea.hbm %s865_s5, 16  ;;  %s639_s7 = int_to_ptr.hbm [resolvable:$true] %s638_s7 }
  0x1b   : > { %s640_s8 = scalar_lea.hbm %s639_s7, 8  ;;  %p645_p1 = scmp.lt.s32.totalorder %s639_s7, %s865_s5 }
  0x1c   : > { %538 = vmatmul.msk.bf16.vlgmr.msra.gmra.mxu0 %vm290_vm0, %v293_v6  ;;  %v332_v15 = vld [vmem:[#allocation2] sm:$0xff]  ;;  %p641_p12 = scmp.ne.s32.totalorder %s639_s7, %s640_s8  ;;  %p646_p2 = scmp.lt.s32.totalorder %s644_s12, %s640_s8 }
  0x1d   : > { %376 = vmatpush.bf16.msra.mxu1 %v563_v7 }
  0x1e   : > { %p642_p13 = pnand %p641_p12, %p775_p4  ;;  %p647_p3 = por %p646_p2, %p645_p1 }
  0x20   : > { %p643_p0 = pneg %p642_p13 }
  0x21   : > { %377 = vmatpush.bf16.msra.mxu1 %v562_v8 }
  0x22   : > { %p648_p5 = pnand %p647_p3, %p643_p0 }
  0x99   : > { %v327_v10 = vpop.f32.mrf.mxu0 }
  0x9a   : > { %v328_v11 = vadd.f32 %v622_v9, %v327_v10 }
  0x9c   : > { %v331_v12 = vmax.f32 %v328_v11, 0.0 }
  0x9e   : > { %v333_v13 = vpack.c.bf16 %v331_v12, %v331_v12 }
  0xa0   : > { %555 = vmatmul.msk.bf16.vlgmr.msra.gmra.mxu1 %vm366_vm1, %v333_v13 }
  0xa1   : > { %v329_v14 = vpop.f32.mrf.mxu0 }
 0x11d   : > { %v379_v16 = vpop.f32.mrf.mxu1 }
 0x11e   : > { %v383_v17 = vadd.f32 %v379_v16, %v332_v15 }
 0x120   : > { %384 = vst.msk [vmem:[#allocation2] sm:$0xff] %vm290_vm0, %v383_v17 }
 0x125   : > { %v381_v19 = vpop.f32.mrf.mxu1 }
 0x127   : > { %v388_v20 = vld [vmem:[#allocation2] sm:$0xff] }
 0x128   : > { %v393_v21 = vadd.f32 %v623_v18, %v388_v20 }
 0x12a   : > { %394 = vst.msk [vmem:[%s267_s25] sm:$0xff] %vm290_vm0, %v393_v21 }
 0x12b   : > { %651 = shalt.err (!%p648_p5)
}
 0x12c   : > { %566 = dma.vmem_to_hbm [thread:$0]  (%p775_p4), %s409_s27, 128, %s411_s29, %s396_s21  }
 0x12d PF: > { %p572_p6 = scmp.ge.s32.totalorder %s702_s23, 2  ;;  %s422_s11 = sand.u32 1, %s682_s18  }
 0x12e   : > { %s423_s15 = scalar_lea.sflag [#allocation4], %s422_s11 }
 0x12f   : > { %p569_p7 = pnand %p572_p6, %p782_p8 }
 0x131   : > { %p570_p9 = pneg %p569_p7 }
 0x133   : > { %677 = dma.done.wait (%p570_p9), %s423_s15, 128  }
 0x134   : > { %679 = vsyncadd (%p570_p9), %s423_s15, 4294967168  ;;  %s18_s23 = sadd.s32 1, %s702_s23   ;;  %s868_s18 = smov %s686_s19 }
 0x135   : > { %p15_p10 = scmp.ge.s32.totalorder %s18_s23, 4   ;;  %s869_s19 = smov %s690_s20 }
 0x136   : > { %s870_s20 = smov %s788_s6  ;;  %s871_s21 = smov %s698_s22 }
 0x137   : > { %s872_s22 = smov %s874_s26  ;;  %17 = sbr.rel (!%p15_p10) target bundleno = 4 (0x4), region = 92 }
 0x13c   :  { %429 = vsyncpa [#allocation4], 1 }
 0x13d   :  { %431 = vsyncpa [#allocation4 + $0x1], 1 }

</bundles_post_ra>
